<compile_context>
chip_gen: v6e
topology: v6e:2x2x1
jax: 0.10.0
libtpu: 0.0.40
codegen_flags: <defaults>
</compile_context>

<pallas_src>
import jax
import jax.numpy as jnp
from jax.experimental import pallas as pl
from jax.experimental.pallas import tpu as pltpu


def _round_up(v, m):
    return ((v + m - 1) // m) * m


# ----------------------------------------------------------------------- kernels
def hidden_small_kernel(x_ref, w1t_ref, b1_ref, h_ref):
    """Whole problem in one block: relu(x @ w1t + b1)."""
    x = x_ref[...]
    w = w1t_ref[...]
    if x.shape[1] == 1:
        # F == 1: outer product -> pure VPU broadcast multiply, skip the MXU.
        h = x * w
    else:
        h = jnp.dot(x, w, preferred_element_type=jnp.float32)
    h_ref[...] = jnp.maximum(h + b1_ref[...], 0.0).astype(h_ref.dtype)


def hidden_tiled_kernel(x_ref, w1t_ref, b1_ref, h_ref, acc_ref):
    """Tiled path. Grid = (row tiles, hidden tiles, K tiles); K accumulates in f32 scratch."""
    k = pl.program_id(2)

    @pl.when(k == 0)
    def _init():
        acc_ref[...] = jnp.zeros_like(acc_ref)

    x = x_ref[...]
    if x.shape[1] == 1:
        acc_ref[...] += x * w1t_ref[...]          # F == 1: VPU broadcast, no MXU
    else:
        acc_ref[...] += jnp.dot(x, w1t_ref[...], preferred_element_type=jnp.float32)

    @pl.when(k == pl.num_programs(2) - 1)
    def _finalize():
        h = acc_ref[...] + b1_ref[...]
        h_ref[...] = jnp.maximum(h, 0.0).astype(h_ref.dtype)


# ----------------------------------------------------------------------- wrapper
def prepare_params(w1, b1, dtype=jnp.float32):
    """One-time parameter prep (hoisted out of the per-call path per perf review):
    pre-transpose the PyTorch (H, F) weight to (F, H) and make the bias a (1, H) row."""
    w1t = jnp.asarray(w1, dtype).T
    b1_row = jnp.asarray(b1, dtype).reshape(1, -1)
    return w1t, b1_row


def net_forward(x, w1t, b1_row):
    """Mirror of Net.forward: returns relu(x @ w1.T + b1).
    (`self.predict`'s output is discarded by the original forward(), so it is not run.)"""
    N, F = x.shape
    Fw, H = w1t.shape
    assert F == Fw and b1_row.shape == (1, H)

    # ---------- small / latency-bound fast path: no padding, no trailing slice ----------
    if N <= 512 and F <= 512 and H <= 512:
        return pl.pallas_call(
            hidden_small_kernel,
            out_shape=jax.ShapeDtypeStruct((N, H), x.dtype),
            grid=(1,),
            in_specs=[
                pl.BlockSpec((N, F), lambda i: (0, 0)),   # full-array blocks: exempt
                pl.BlockSpec((F, H), lambda i: (0, 0)),   # from the (8,128) rule
                pl.BlockSpec((1, H), lambda i: (0, 0)),
            ],
            out_specs=pl.BlockSpec((N, H), lambda i: (0, 0)),
            compiler_params=pltpu.CompilerParams(
                dimension_semantics=("arbitrary",)),
        )(x, w1t, b1_row)

    # ---------- large-shape tiled path ----------
    MAX_TILE_N = 1024
    if N <= MAX_TILE_N:
        tile_n = N                                  # single row block (full-dim exempt)
    elif N <= 2 * MAX_TILE_N:
        tile_n = _round_up(-(-N // 2), 8)           # >= 2 row blocks so both v7x TCs work
    else:
        tile_n = MAX_TILE_N

    tile_h = H if H <= 1024 else 512                # full-H block is exempt; else lane tiles
    tile_k = F if F <= 1024 else 512                # K tiling keeps VMEM bounded for big F

    # A ragged K block would accumulate garbage into valid outputs, so zero-pad the
    # contraction dim in that (rare, very-large-F) case only.  Ragged N / H blocks are
    # fine: out-of-bounds output rows/lanes are simply never written back.
    if F % tile_k != 0:
        Fp = _round_up(F, tile_k)
        x = jnp.zeros((N, Fp), x.dtype).at[:, :F].set(x)
        w1t = jnp.zeros((Fp, H), w1t.dtype).at[:F, :].set(w1t)
        F = Fp

    grid = (pl.cdiv(N, tile_n), pl.cdiv(H, tile_h), pl.cdiv(F, tile_k))

    # Raise the scoped-VMEM limit only when the tile working set needs it
    # (v5e default is 16 MiB); cap at 64 MiB so the same config is v7x-safe.
    est_bytes = 4 * (2 * (tile_n * tile_k + tile_k * tile_h + tile_h + tile_n * tile_h)
                     + tile_n * tile_h)
    cp_kwargs = dict(dimension_semantics=("parallel", "parallel", "arbitrary"))
    if est_bytes > (16 << 20):
        cp_kwargs["vmem_limit_bytes"] = int(min(64 << 20, max(32 << 20, 2 * est_bytes)))

    return pl.pallas_call(
        hidden_tiled_kernel,
        out_shape=jax.ShapeDtypeStruct((N, H), x.dtype),
        grid=grid,
        in_specs=[
            pl.BlockSpec((tile_n, tile_k), lambda i, j, k: (i, k)),
            pl.BlockSpec((tile_k, tile_h), lambda i, j, k: (k, j)),
            pl.BlockSpec((1, tile_h), lambda i, j, k: (0, j)),
        ],
        out_specs=pl.BlockSpec((tile_n, tile_h), lambda i, j, k: (i, j)),
        scratch_shapes=[pltpu.VMEM((tile_n, tile_h), jnp.float32)],
        compiler_params=pltpu.CompilerParams(**cp_kwargs),
    )(x, w1t, b1_row)


def torch_linear_init(key, out_features, in_features):
    """Deterministic PyTorch-style Linear init: U(-1/sqrt(fan_in), 1/sqrt(fan_in))."""
    kw, kb = jax.random.split(key)
    bound = 1.0 / jnp.sqrt(jnp.float32(in_features))
    w = jax.random.uniform(kw, (out_features, in_features), jnp.float32, -bound, bound)
    b = jax.random.uniform(kb, (out_features,), jnp.float32, -bound, bound)
    return w, b


if __name__ == "__main__":
    # ---- the module's actual shapes: Net(n_feature=1, n_hidden=10, n_output=1), N=100 ----
    n_feature, n_hidden, n_output = 1, 10, 1
    N = 100

    key = jax.random.PRNGKey(0)
    k1, k2, k3, k4 = jax.random.split(key, 4)

    # x = torch.unsqueeze(torch.linspace(-1, 1, 100), dim=1)
    x = jnp.linspace(-1.0, 1.0, N, dtype=jnp.float32).reshape(N, 1)

    w1, b1 = torch_linear_init(k1, n_hidden, n_feature)   # hidden: Linear(1, 10)
    w2, b2 = torch_linear_init(k2, n_output, n_hidden)    # predict: Linear(10, 1) — dead in forward()

    w1t, b1_row = prepare_params(w1, b1)                  # hoisted one-time prep

    out = jax.block_until_ready(net_forward(x, w1t, b1_row))
    ref = jnp.maximum(x @ w1.T + b1, 0.0)                 # forward() returns the hidden activation
    assert out.shape == (N, n_hidden)
    assert jnp.allclose(out, ref, atol=1e-5, rtol=1e-5)

    # ---- also exercise the tiled (large-shape) path: ragged row blocks + MXU accumulate ----
    N2, F2, H2 = 1500, 64, 256
    x2 = jax.random.normal(k3, (N2, F2), jnp.float32)
    w1b, b1b = torch_linear_init(k4, H2, F2)
    w1bt, b1b_row = prepare_params(w1b, b1b)
    out2 = jax.block_until_ready(net_forward(x2, w1bt, b1b_row))
    ref2 = jnp.maximum(x2 @ w1b.T + b1b, 0.0)
    assert out2.shape == (N2, H2)
    # Loose tolerance: MXU f32 pass decomposition may differ slightly from XLA's default matmul.
    assert jnp.allclose(out2, ref2, atol=3e-2, rtol=3e-2)

    print("KERNEL_OK")
</pallas_src>

<mosaic_0001>
module attributes {stable_mosaic.version = 11 : i64} {
  func.func @hidden_small_kernel(%arg0: i32, %arg1: memref<100x1xf32, #tpu.memory_space<vmem>>, %arg2: memref<1x10xf32, #tpu.memory_space<vmem>>, %arg3: memref<1x10xf32, #tpu.memory_space<vmem>>, %arg4: memref<100x10xf32, #tpu.memory_space<vmem>>) attributes {dimension_semantics = [#tpu.dimension_semantics<arbitrary>], iteration_bounds = array<i64: 1>, scalar_prefetch = 0 : i64, scratch_operands = 0 : i64, tpu.core_type = #tpu.core_type<tc>, window_params = [{pipeline_mode = #tpu.pipeline_mode<synchronous>, transform_indices = @transform_0, window_bounds = array<i64: 100, 1>}, {pipeline_mode = #tpu.pipeline_mode<synchronous>, transform_indices = @transform_1, window_bounds = array<i64: 1, 10>}, {pipeline_mode = #tpu.pipeline_mode<synchronous>, transform_indices = @transform_2, window_bounds = array<i64: 1, 10>}, {pipeline_mode = #tpu.pipeline_mode<synchronous>, transform_indices = @transform_3, window_bounds = array<i64: 100, 10>}]} {
    %c0 = arith.constant 0 : index
    %c0_0 = arith.constant 0 : index
    %0 = vector.load %arg1[%c0, %c0_0] : memref<100x1xf32, #tpu.memory_space<vmem>>, vector<100x1xf32>
    %c0_1 = arith.constant 0 : index
    %c0_2 = arith.constant 0 : index
    %1 = vector.load %arg2[%c0_1, %c0_2] : memref<1x10xf32, #tpu.memory_space<vmem>>, vector<1x10xf32>
    %2 = vector.broadcast %0 : vector<100x1xf32> to vector<100x10xf32>
    %3 = vector.broadcast %1 : vector<1x10xf32> to vector<100x10xf32>
    %4 = arith.mulf %2, %3 : vector<100x10xf32>
    %c0_3 = arith.constant 0 : index
    %c0_4 = arith.constant 0 : index
    %5 = vector.load %arg3[%c0_3, %c0_4] : memref<1x10xf32, #tpu.memory_space<vmem>>, vector<1x10xf32>
    %6 = vector.broadcast %5 : vector<1x10xf32> to vector<100x10xf32>
    %7 = arith.addf %4, %6 : vector<100x10xf32>
    %cst = arith.constant 0.000000e+00 : f32
    %8 = vector.broadcast %cst : f32 to vector<100x10xf32>
    %9 = arith.maximumf %7, %8 : vector<100x10xf32>
    %c0_5 = arith.constant 0 : index
    %c0_6 = arith.constant 0 : index
    %10 = vector.load %arg4[%c0_5, %c0_6] : memref<100x10xf32, #tpu.memory_space<vmem>>, vector<100x10xf32>
    tpu.vector_store %arg4[%c0_5, %c0_6], %9 {strides = array<i32>} : memref<100x10xf32, #tpu.memory_space<vmem>>, vector<100x10xf32>,
    return
  }
  func.func @transform_0(%arg0: i32) -> (i32, i32) {
    %c0_i32 = arith.constant 0 : i32
    %c0_i32_0 = arith.constant 0 : i32
    %c0_i32_1 = arith.constant 0 : i32
    return %c0_i32, %c0_i32_0 : i32, i32
  }
  func.func @transform_1(%arg0: i32) -> (i32, i32) {
    %c0_i32 = arith.constant 0 : i32
    %c0_i32_0 = arith.constant 0 : i32
    %c0_i32_1 = arith.constant 0 : i32
    return %c0_i32, %c0_i32_0 : i32, i32
  }
  func.func @transform_2(%arg0: i32) -> (i32, i32) {
    %c0_i32 = arith.constant 0 : i32
    %c0_i32_0 = arith.constant 0 : i32
    %c0_i32_1 = arith.constant 0 : i32
    return %c0_i32, %c0_i32_0 : i32, i32
  }
  func.func @transform_3(%arg0: i32) -> (i32, i32) {
    %c0_i32 = arith.constant 0 : i32
    %c0_i32_0 = arith.constant 0 : i32
    %c0_i32_1 = arith.constant 0 : i32
    return %c0_i32, %c0_i32_0 : i32, i32
  }
}

</mosaic_0001>

<bundles_post_ra>
// kernel: tpu_custom_call.1
= control target key start
LH: loop header
LB: loop body
LE: loop exit
PB: predicated region body
PF: predicated region fallthrough
CT: control target
= control target key end

     0   :  { %v169_v0 = vmov 0   ;;  %vm145_vm0 = vcmask 80896   ;;  %vm158_vm1 = vcmask 76800   ;;  %s316_s0 = inlined_call_operand.vmem [shape: f32[100,1], index: 0, kind: input, shape index: {}]   ;;  %s317_s1 = inlined_call_operand.vmem [shape: f32[1,10], index: 1, kind: input, shape index: {}]   ;;  %s318_s2 = inlined_call_operand.vmem [shape: f32[1,10], index: 2, kind: input, shape index: {}]   ;;  %s319_s3 = inlined_call_operand.vmem [shape: f32[100,10], index: 3, kind: output, shape index: {}]  }
   0x1   :  { %168 = vset.pattern.permute.xlu1 %v169_v0  ;;  %167 = vset.pattern.permute.xlu0 %v169_v0  ;;  %v16_v1 = vld [vmem:[%s316_s0 + $0x10] sm:$0xff]  ;;  %v14_v2 = vld [vmem:[%s316_s0] sm:$0xff]  ;;  %v17_v3 = vld [vmem:[%s316_s0 + $0x18] sm:$0xff] }
   0x2   :  { %40 = vperm.xlu1 %168, %v16_v1   ;;  %30 = vperm.xlu0 %167, %v14_v2   ;;  %v15_v4 = vld [vmem:[%s316_s0 + $0x8] sm:$0xff]  ;;  %v18_v6 = vld [vmem:[%s316_s0 + $0x20] sm:$0xff]  ;;  %v21_v7 = vld [vmem:[%s316_s0 + $0x38] sm:$0xff] }
   0x3   :  { %v19_v5 = vld [vmem:[%s316_s0 + $0x28] sm:$0xff]  ;;  %v20_v8 = vld [vmem:[%s316_s0 + $0x30] sm:$0xff]  ;;  %v22_v10 = vld [vmem:[%s316_s0 + $0x40] sm:$0xff] }
   0x4   :  { %v23_v9 = vld [vmem:[%s316_s0 + $0x48] sm:$0xff]  ;;  %v25_v11 = vld [vmem:[%s316_s0 + $0x58] sm:$0xff]  ;;  %v24_v12 = vld [vmem:[%s316_s0 + $0x50] sm:$0xff] }
   0x5   :  { %v26_v13 = vld [vmem:[%s316_s0 + $0x60] sm:$0xf] }
   0x6   :  { %45 = vperm.xlu1 %168, %v17_v3   ;;  %35 = vperm.xlu0 %167, %v15_v4   ;;  %v232_v14 = vld [vmem:[%s317_s1] ss:$0 sm:$0xff] }
   0x7   :  { %v237_v15 = vld [vmem:[%s318_s2] ss:$0 sm:$0xff] }
   0xa   :  { %55 = vperm.xlu1 %168, %v19_v5   ;;  %50 = vperm.xlu0 %167, %v18_v6  }
   0xe   :  { %65 = vperm.xlu1 %168, %v21_v7   ;;  %60 = vperm.xlu0 %167, %v20_v8  }
  0x12   :  { %75 = vperm.xlu1 %168, %v23_v9   ;;  %70 = vperm.xlu0 %167, %v22_v10  }
  0x16   :  { %85 = vperm.xlu1 %168, %v25_v11   ;;  %80 = vperm.xlu0 %167, %v24_v12  }
  0x1a   :  { %90 = vperm.xlu0 %167, %v26_v13  }
  0x7d   :  { %v41_v16 = vpop.permute.xlu1 %40  ;;  %v31_v17 = vpop.permute.xlu0 %30 }
  0x7e   :  { %v101_v18 = vmul.f32 %v232_v14, %v41_v16  ;;  %v99_v19 = vmul.f32 %v232_v14, %v31_v17 }
  0x80   :  { %v121_v20 = vadd.f32 %v237_v15, %v101_v18  ;;  %v119_v21 = vadd.f32 %v237_v15, %v99_v19 }
  0x81   :  { %v46_v22 = vpop.permute.xlu1 %45  ;;  %v36_v23 = vpop.permute.xlu0 %35 }
  0x82   :  { %v134_v24 = vmax.f32 %v121_v20, 0.0  ;;  %v132_v25 = vmax.f32 %v119_v21, 0.0  ;;  %v102_v26 = vmul.f32 %v232_v14, %v46_v22  ;;  %v100_v27 = vmul.f32 %v232_v14, %v36_v23 }
  0x84   :  { %148 = vst.msk [vmem:[%s319_s3 + $0x10] sm:$0xff] %vm145_vm0, %v134_v24  ;;  %146 = vst.msk [vmem:[%s319_s3] sm:$0xff] %vm145_vm0, %v132_v25  ;;  %v122_v28 = vadd.f32 %v237_v15, %v102_v26  ;;  %v120_v29 = vadd.f32 %v237_v15, %v100_v27 }
  0x85   :  { %v56_v30 = vpop.permute.xlu1 %55  ;;  %v51_v31 = vpop.permute.xlu0 %50 }
  0x86   :  { %v135_v32 = vmax.f32 %v122_v28, 0.0  ;;  %v133_v33 = vmax.f32 %v120_v29, 0.0  ;;  %v104_v34 = vmul.f32 %v232_v14, %v56_v30  ;;  %v103_v35 = vmul.f32 %v232_v14, %v51_v31 }
  0x88   :  { %149 = vst.msk [vmem:[%s319_s3 + $0x18] sm:$0xff] %vm145_vm0, %v135_v32  ;;  %147 = vst.msk [vmem:[%s319_s3 + $0x8] sm:$0xff] %vm145_vm0, %v133_v33  ;;  %v124_v36 = vadd.f32 %v237_v15, %v104_v34  ;;  %v123_v37 = vadd.f32 %v237_v15, %v103_v35 }
  0x89   :  { %v66_v38 = vpop.permute.xlu1 %65  ;;  %v61_v39 = vpop.permute.xlu0 %60 }
  0x8a   :  { %v137_v40 = vmax.f32 %v124_v36, 0.0  ;;  %v136_v41 = vmax.f32 %v123_v37, 0.0  ;;  %v106_v42 = vmul.f32 %v232_v14, %v66_v38  ;;  %v105_v43 = vmul.f32 %v232_v14, %v61_v39 }
  0x8c   :  { %151 = vst.msk [vmem:[%s319_s3 + $0x28] sm:$0xff] %vm145_vm0, %v137_v40  ;;  %150 = vst.msk [vmem:[%s319_s3 + $0x20] sm:$0xff] %vm145_vm0, %v136_v41  ;;  %v126_v44 = vadd.f32 %v237_v15, %v106_v42  ;;  %v125_v45 = vadd.f32 %v237_v15, %v105_v43 }
  0x8d   :  { %v76_v46 = vpop.permute.xlu1 %75  ;;  %v71_v47 = vpop.permute.xlu0 %70 }
  0x8e   :  { %v139_v48 = vmax.f32 %v126_v44, 0.0  ;;  %v138_v49 = vmax.f32 %v125_v45, 0.0  ;;  %v108_v50 = vmul.f32 %v232_v14, %v76_v46  ;;  %v107_v51 = vmul.f32 %v232_v14, %v71_v47 }
  0x90   :  { %153 = vst.msk [vmem:[%s319_s3 + $0x38] sm:$0xff] %vm145_vm0, %v139_v48  ;;  %152 = vst.msk [vmem:[%s319_s3 + $0x30] sm:$0xff] %vm145_vm0, %v138_v49  ;;  %v128_v52 = vadd.f32 %v237_v15, %v108_v50  ;;  %v127_v53 = vadd.f32 %v237_v15, %v107_v51 }
  0x91   :  { %v86_v54 = vpop.permute.xlu1 %85  ;;  %v81_v55 = vpop.permute.xlu0 %80 }
  0x92   :  { %v141_v56 = vmax.f32 %v128_v52, 0.0  ;;  %v140_v57 = vmax.f32 %v127_v53, 0.0  ;;  %v110_v58 = vmul.f32 %v232_v14, %v86_v54  ;;  %v109_v59 = vmul.f32 %v232_v14, %v81_v55 }
  0x94   :  { %155 = vst.msk [vmem:[%s319_s3 + $0x48] sm:$0xff] %vm145_vm0, %v141_v56  ;;  %154 = vst.msk [vmem:[%s319_s3 + $0x40] sm:$0xff] %vm145_vm0, %v140_v57  ;;  %v130_v60 = vadd.f32 %v237_v15, %v110_v58  ;;  %v129_v61 = vadd.f32 %v237_v15, %v109_v59 }
  0x95   :  { %v91_v62 = vpop.permute.xlu0 %90 }
  0x96   :  { %v143_v63 = vmax.f32 %v130_v60, 0.0  ;;  %v142_v0 = vmax.f32 %v129_v61, 0.0  ;;  %v111_v1 = vmul.f32 %v232_v14, %v91_v62 }
  0x98   :  { %157 = vst.msk [vmem:[%s319_s3 + $0x58] sm:$0xff] %vm145_vm0, %v143_v63  ;;  %156 = vst.msk [vmem:[%s319_s3 + $0x50] sm:$0xff] %vm145_vm0, %v142_v0  ;;  %v131_v2 = vadd.f32 %v237_v15, %v111_v1 }
  0x9a   :  { %v144_v3 = vmax.f32 %v131_v2, 0.0 }
  0x9c   :  { %159 = vst.msk [vmem:[%s319_s3 + $0x60] sm:$0xf] %vm158_vm1, %v144_v3 }

</bundles_post_ra>
